<compile_context>
chip_gen: v7x
topology: tpu7x:2x2x1
jax: 0.10.0
libtpu: 0.0.40
codegen_flags: <defaults>
</compile_context>

<pallas_src>
import jax
import jax.numpy as jnp
import numpy as np
from jax import lax
from jax.experimental import pallas as pl
from jax.experimental.pallas import tpu as pltpu

LANES = 128


def _pad_modes(m):
    """Pad the flattened mode count up to a multiple of the 128-lane vreg width."""
    return ((m + LANES - 1) // LANES) * LANES


def spectral_mul_kernel(xr_ref, xi_ref, wr_ref, wi_ref, or_ref, oi_ref):
    """out[o, m] = sum_i x[i, m] * w[i, o, m]  (complex), per (batch, o-tile) grid step.

    Kernel-ref shapes (all f32, Mp = flattened mode count padded to a 128 multiple):
      xr_ref, xi_ref : (Ci, Mp)        Re/Im of truncated x_ft for this batch element
      wr_ref, wi_ref : (Ci, co_t, Mp)  Re/Im of the weights for this output-channel tile
      or_ref, oi_ref : (co_t, Mp)      Re/Im of the output rows

    Pure VPU elementwise work.  Each input-channel term broadcasts one x row across
    the co_t output rows via a size-1 sublane dim; only outer-axis ref indexing
    (cheap views), lane-aligned unmasked stores.
    """
    ci = wr_ref.shape[0]

    def term(i):
        a = xr_ref[pl.ds(i, 1), :]   # (1, Mp)     Re(x_i) — sublane-broadcast vs co_t rows
        b = xi_ref[pl.ds(i, 1), :]   # (1, Mp)     Im(x_i)
        c = wr_ref[i]                # (co_t, Mp)  Re(w_i)
        d = wi_ref[i]                # (co_t, Mp)  Im(w_i)
        # (a + ib)(c + id):  Re = a*c - b*d,  Im = a*d + b*c   (4 mul / 2 add; mul and
        # add share VALU slots so Karatsuba buys nothing — memory-bound kernel)
        return a * c - b * d, a * d + b * c

    # Static unroll is fine at Ci=4 (few live vregs).
    # TODO(synk): at realistic Ci (>=16) switch to lax.fori_loop(..., unroll=4) or a
    # trailing "arbitrary" Ci grid axis + VMEM accumulator to bound vreg pressure and
    # let BlockSpec pipeline the Ci stream.
    acc_r, acc_i = term(0)           # init from the first term (no zeros + add)
    for i in range(1, ci):
        t_r, t_i = term(i)
        acc_r = acc_r + t_r
        acc_i = acc_i + t_i

    or_ref[...] = acc_r              # lane-dense (Mp multiple of 128), unmasked stores
    oi_ref[...] = acc_i


def spectral_mode_mul(xr, xi, wr, wi, *, co_tile=None):
    """Mode-wise complex contraction  out[b, o, m] = sum_i x[b, i, m] * w[i, o, m].

    xr, xi : (B, Ci, Mp) f32   (NOT replicated across Co)
    wr, wi : (Ci, Co, Mp) f32  (NOT replicated across B)
    returns (out_r, out_i), each (B, Co, Mp) f32
    """
    B, Ci, Mp = xr.shape
    _, Co, _ = wr.shape
    if co_tile is None:
        co_tile = Co
    assert Co % co_tile == 0
    # (8,128) rule: a partial Co tile must be sublane-aligned; full-extent is always ok.
    assert co_tile == Co or co_tile % 8 == 0, "partial Co tiles must be multiples of 8"
    n_ot = Co // co_tile

    grid_spec = pltpu.PrefetchScalarGridSpec(
        num_scalar_prefetch=0,
        # o-tile is the inner grid axis -> the x block (index_map ignores ot) stays
        # resident across all output-channel tiles of a batch element.
        grid=(B, n_ot),
        in_specs=[
            pl.BlockSpec((None, Ci, Mp), lambda b, ot: (b, 0, 0)),      # xr  (ignores ot)
            pl.BlockSpec((None, Ci, Mp), lambda b, ot: (b, 0, 0)),      # xi  (ignores ot)
            pl.BlockSpec((Ci, co_tile, Mp), lambda b, ot: (0, ot, 0)),  # wr  (ignores b)
            pl.BlockSpec((Ci, co_tile, Mp), lambda b, ot: (0, ot, 0)),  # wi  (ignores b)
        ],
        out_specs=[
            pl.BlockSpec((None, co_tile, Mp), lambda b, ot: (b, ot, 0)),
            pl.BlockSpec((None, co_tile, Mp), lambda b, ot: (b, ot, 0)),
        ],
    )

    out_shape = (jax.ShapeDtypeStruct((B, Co, Mp), jnp.float32),
                 jax.ShapeDtypeStruct((B, Co, Mp), jnp.float32))

    return pl.pallas_call(
        spectral_mul_kernel,
        out_shape=out_shape,
        grid_spec=grid_spec,
        compiler_params=pltpu.CompilerParams(
            # Both grid axes are independent -> shardable across v7x's 2 TensorCores;
            # neutral on v5e/v6e (1 TC).  No reduction is carried across the grid.
            dimension_semantics=("parallel", "parallel"),
            # Headroom for v7x's 64 MiB physical VMEM; at realistic Ci/Co/B pick
            # co_tile so 2*(x + w blocks) + out blocks stays well under this.
            vmem_limit_bytes=32 * 1024 * 1024,
        ),
    )(xr, xi, wr, wi)


def prepare_weights(R_real, R_imag):
    """One-time weight layout prep (batch-independent, NOT in the per-call path).

    (Ci, Co, m1, m2) complex weights -> two (Ci, Co, Mp) f32 slabs [Re], [Im],
    mode axis flattened and zero-padded to a 128-lane multiple.
    """
    ci, co, m1, m2 = R_real.shape
    m = m1 * m2
    mp = _pad_modes(m)
    pad = ((0, 0), (0, 0), (0, mp - m))
    wr = jnp.pad(R_real.reshape(ci, co, m).astype(jnp.float32), pad)
    wi = jnp.pad(R_imag.reshape(ci, co, m).astype(jnp.float32), pad)
    return wr, wi


def spectral_conv2d(x, wr, wi, n_modes1, n_modes2):
    """Forward pass matching SpectralConv2D.forward (x: (B, C_in, H, W), float32)."""
    B, Ci, H, W = x.shape
    _, Co, Mp = wr.shape
    Wr = W // 2 + 1
    assert H >= n_modes1
    assert Wr >= n_modes2
    M = n_modes1 * n_modes2
    assert Mp == _pad_modes(M)

    # TODO(synk): rfft2 / irfft2 have no Pallas primitive — plain JAX/XLA glue.
    x_ft = jnp.fft.rfft2(x)                                       # (B, Ci, H, Wr) c64
    x_tr = x_ft[:, :, :n_modes1, :n_modes2].reshape(B, Ci, M)     # truncated modes

    # Re/Im kept as two Mp-wide slabs in natural (B, Ci, M) row order: no transpose,
    # no concat, no replication across Co (layout plumbing fuses under jit).
    pad = ((0, 0), (0, 0), (0, Mp - M))
    xr = jnp.pad(jnp.real(x_tr).astype(jnp.float32), pad)
    xi = jnp.pad(jnp.imag(x_tr).astype(jnp.float32), pad)
    # TODO(synk): for a further ~2x HBM cut at scale, store xr/xi/wr/wi as bf16 and
    # upcast in-kernel (validate FNO accuracy first).

    out_r, out_i = spectral_mode_mul(xr, xi, wr, wi)              # (B, Co, Mp) each

    out_modes = lax.complex(out_r[:, :, :M], out_i[:, :, :M]).reshape(
        B, Co, n_modes1, n_modes2)

    # Zero-pad up to the full spectrum instead of zeros + scatter-set.
    out_ft = jnp.pad(out_modes,
                     ((0, 0), (0, 0), (0, H - n_modes1), (0, Wr - n_modes2)))

    # irfft2 with the PyTorch default sizing: s = (H, 2*(Wr-1))  (== (H, W) for even W,
    # and matches torch.fft.irfft2's default for odd W as well).
    out = jnp.fft.irfft2(out_ft, s=(H, 2 * (Wr - 1)))
    return out.astype(jnp.float32)


def spectral_conv2d_reference(x, R_real, R_imag, n_modes1, n_modes2):
    """Pure-JAX reference (mirrors the PyTorch module) for correctness check."""
    B, Ci, H, W = x.shape
    Co = R_real.shape[1]
    Wr = W // 2 + 1
    x_ft = jnp.fft.rfft2(x)
    R = (R_real + 1j * R_imag).astype(jnp.complex64)
    prod = jnp.einsum('bixy,ioxy->boxy', x_ft[:, :, :n_modes1, :n_modes2], R)
    out_ft = jnp.zeros((B, Co, H, Wr), dtype=jnp.complex64)
    out_ft = out_ft.at[:, :, :n_modes1, :n_modes2].set(prod)
    return jnp.fft.irfft2(out_ft, s=(H, 2 * (Wr - 1))).astype(jnp.float32)


if __name__ == "__main__":
    # Module config (small shapes consistent with the PyTorch module)
    batch, in_ch, out_ch = 2, 4, 4
    H = W = 16
    n_modes1, n_modes2 = 8, 5          # requires H >= 8 and W//2+1 = 9 >= 5
    scale = 1.0 / (in_ch * out_ch)

    key = jax.random.PRNGKey(0)
    kx, kr, ki = jax.random.split(key, 3)

    # Deterministic parameter init: scale * U[0,1) for Re and Im parts
    # (mirrors torch.rand(..., dtype=torch.cfloat)).
    R_real = scale * jax.random.uniform(
        kr, (in_ch, out_ch, n_modes1, n_modes2), dtype=jnp.float32)
    R_imag = scale * jax.random.uniform(
        ki, (in_ch, out_ch, n_modes1, n_modes2), dtype=jnp.float32)
    x = jax.random.normal(kx, (batch, in_ch, H, W), dtype=jnp.float32)

    # One-time, batch-independent weight layout prep.
    wr, wi = jax.block_until_ready(prepare_weights(R_real, R_imag))

    fwd = jax.jit(lambda x_, wr_, wi_: spectral_conv2d(x_, wr_, wi_, n_modes1, n_modes2))
    out = jax.block_until_ready(fwd(x, wr, wi))

    ref = jax.block_until_ready(
        spectral_conv2d_reference(x, R_real, R_imag, n_modes1, n_modes2))

    assert out.shape == (batch, out_ch, H, W), out.shape
    np.testing.assert_allclose(np.asarray(out), np.asarray(ref), rtol=1e-5, atol=1e-5)

    print("KERNEL_OK")
</pallas_src>

<mosaic_0001>
module attributes {stable_mosaic.version = 11 : i64} {
  func.func @spectral_mul_kernel(%arg0: i32, %arg1: i32, %arg2: memref<1x4x128xf32, #tpu.memory_space<vmem>>, %arg3: memref<1x4x128xf32, #tpu.memory_space<vmem>>, %arg4: memref<4x4x128xf32, #tpu.memory_space<vmem>>, %arg5: memref<4x4x128xf32, #tpu.memory_space<vmem>>, %arg6: memref<1x4x128xf32, #tpu.memory_space<vmem>>, %arg7: memref<1x4x128xf32, #tpu.memory_space<vmem>>) attributes {dimension_semantics = [#tpu.dimension_semantics<parallel>, #tpu.dimension_semantics<parallel>], iteration_bounds = array<i64: 2, 1>, scalar_prefetch = 0 : i64, scratch_operands = 0 : i64, tpu.core_type = #tpu.core_type<tc>, window_params = [{transform_indices = @transform_0, window_bounds = array<i64: 1, 4, 128>}, {transform_indices = @transform_1, window_bounds = array<i64: 1, 4, 128>}, {transform_indices = @transform_2, window_bounds = array<i64: 4, 4, 128>}, {transform_indices = @transform_3, window_bounds = array<i64: 4, 4, 128>}, {transform_indices = @transform_4, window_bounds = array<i64: 1, 4, 128>}, {transform_indices = @transform_5, window_bounds = array<i64: 1, 4, 128>}]} {
    %c0 = arith.constant 0 : index
    %c0_0 = arith.constant 0 : index
    %c0_1 = arith.constant 0 : index
    %0 = vector.load %arg2[%c0, %c0_0, %c0_1] : memref<1x4x128xf32, #tpu.memory_space<vmem>>, vector<1x1x128xf32>
    %1 = vector.shape_cast %0 : vector<1x1x128xf32> to vector<1x128xf32>
    %c0_2 = arith.constant 0 : index
    %c0_3 = arith.constant 0 : index
    %c0_4 = arith.constant 0 : index
    %2 = vector.load %arg3[%c0_2, %c0_3, %c0_4] : memref<1x4x128xf32, #tpu.memory_space<vmem>>, vector<1x1x128xf32>
    %3 = vector.shape_cast %2 : vector<1x1x128xf32> to vector<1x128xf32>
    %c0_5 = arith.constant 0 : index
    %c0_6 = arith.constant 0 : index
    %c0_7 = arith.constant 0 : index
    %4 = vector.load %arg4[%c0_5, %c0_6, %c0_7] : memref<4x4x128xf32, #tpu.memory_space<vmem>>, vector<1x4x128xf32>
    %5 = vector.shape_cast %4 : vector<1x4x128xf32> to vector<4x128xf32>
    %c0_8 = arith.constant 0 : index
    %c0_9 = arith.constant 0 : index
    %c0_10 = arith.constant 0 : index
    %6 = vector.load %arg5[%c0_8, %c0_9, %c0_10] : memref<4x4x128xf32, #tpu.memory_space<vmem>>, vector<1x4x128xf32>
    %7 = vector.shape_cast %6 : vector<1x4x128xf32> to vector<4x128xf32>
    %8 = vector.broadcast %1 : vector<1x128xf32> to vector<4x128xf32>
    %9 = arith.mulf %8, %5 : vector<4x128xf32>
    %10 = vector.broadcast %3 : vector<1x128xf32> to vector<4x128xf32>
    %11 = arith.mulf %10, %7 : vector<4x128xf32>
    %12 = arith.subf %9, %11 : vector<4x128xf32>
    %13 = vector.broadcast %1 : vector<1x128xf32> to vector<4x128xf32>
    %14 = arith.mulf %13, %7 : vector<4x128xf32>
    %15 = vector.broadcast %3 : vector<1x128xf32> to vector<4x128xf32>
    %16 = arith.mulf %15, %5 : vector<4x128xf32>
    %17 = arith.addf %14, %16 : vector<4x128xf32>
    %c0_11 = arith.constant 0 : index
    %c1 = arith.constant 1 : index
    %c0_12 = arith.constant 0 : index
    %18 = vector.load %arg2[%c0_11, %c1, %c0_12] : memref<1x4x128xf32, #tpu.memory_space<vmem>>, vector<1x1x128xf32>
    %19 = vector.shape_cast %18 : vector<1x1x128xf32> to vector<1x128xf32>
    %c0_13 = arith.constant 0 : index
    %c1_14 = arith.constant 1 : index
    %c0_15 = arith.constant 0 : index
    %20 = vector.load %arg3[%c0_13, %c1_14, %c0_15] : memref<1x4x128xf32, #tpu.memory_space<vmem>>, vector<1x1x128xf32>
    %21 = vector.shape_cast %20 : vector<1x1x128xf32> to vector<1x128xf32>
    %c1_16 = arith.constant 1 : index
    %c0_17 = arith.constant 0 : index
    %c0_18 = arith.constant 0 : index
    %22 = vector.load %arg4[%c1_16, %c0_17, %c0_18] : memref<4x4x128xf32, #tpu.memory_space<vmem>>, vector<1x4x128xf32>
    %23 = vector.shape_cast %22 : vector<1x4x128xf32> to vector<4x128xf32>
    %c1_19 = arith.constant 1 : index
    %c0_20 = arith.constant 0 : index
    %c0_21 = arith.constant 0 : index
    %24 = vector.load %arg5[%c1_19, %c0_20, %c0_21] : memref<4x4x128xf32, #tpu.memory_space<vmem>>, vector<1x4x128xf32>
    %25 = vector.shape_cast %24 : vector<1x4x128xf32> to vector<4x128xf32>
    %26 = vector.broadcast %19 : vector<1x128xf32> to vector<4x128xf32>
    %27 = arith.mulf %26, %23 : vector<4x128xf32>
    %28 = vector.broadcast %21 : vector<1x128xf32> to vector<4x128xf32>
    %29 = arith.mulf %28, %25 : vector<4x128xf32>
    %30 = arith.subf %27, %29 : vector<4x128xf32>
    %31 = vector.broadcast %19 : vector<1x128xf32> to vector<4x128xf32>
    %32 = arith.mulf %31, %25 : vector<4x128xf32>
    %33 = vector.broadcast %21 : vector<1x128xf32> to vector<4x128xf32>
    %34 = arith.mulf %33, %23 : vector<4x128xf32>
    %35 = arith.addf %32, %34 : vector<4x128xf32>
    %36 = arith.addf %12, %30 : vector<4x128xf32>
    %37 = arith.addf %17, %35 : vector<4x128xf32>
    %c0_22 = arith.constant 0 : index
    %c2 = arith.constant 2 : index
    %c0_23 = arith.constant 0 : index
    %38 = vector.load %arg2[%c0_22, %c2, %c0_23] : memref<1x4x128xf32, #tpu.memory_space<vmem>>, vector<1x1x128xf32>
    %39 = vector.shape_cast %38 : vector<1x1x128xf32> to vector<1x128xf32>
    %c0_24 = arith.constant 0 : index
    %c2_25 = arith.constant 2 : index
    %c0_26 = arith.constant 0 : index
    %40 = vector.load %arg3[%c0_24, %c2_25, %c0_26] : memref<1x4x128xf32, #tpu.memory_space<vmem>>, vector<1x1x128xf32>
    %41 = vector.shape_cast %40 : vector<1x1x128xf32> to vector<1x128xf32>
    %c2_27 = arith.constant 2 : index
    %c0_28 = arith.constant 0 : index
    %c0_29 = arith.constant 0 : index
    %42 = vector.load %arg4[%c2_27, %c0_28, %c0_29] : memref<4x4x128xf32, #tpu.memory_space<vmem>>, vector<1x4x128xf32>
    %43 = vector.shape_cast %42 : vector<1x4x128xf32> to vector<4x128xf32>
    %c2_30 = arith.constant 2 : index
    %c0_31 = arith.constant 0 : index
    %c0_32 = arith.constant 0 : index
    %44 = vector.load %arg5[%c2_30, %c0_31, %c0_32] : memref<4x4x128xf32, #tpu.memory_space<vmem>>, vector<1x4x128xf32>
    %45 = vector.shape_cast %44 : vector<1x4x128xf32> to vector<4x128xf32>
    %46 = vector.broadcast %39 : vector<1x128xf32> to vector<4x128xf32>
    %47 = arith.mulf %46, %43 : vector<4x128xf32>
    %48 = vector.broadcast %41 : vector<1x128xf32> to vector<4x128xf32>
    %49 = arith.mulf %48, %45 : vector<4x128xf32>
    %50 = arith.subf %47, %49 : vector<4x128xf32>
    %51 = vector.broadcast %39 : vector<1x128xf32> to vector<4x128xf32>
    %52 = arith.mulf %51, %45 : vector<4x128xf32>
    %53 = vector.broadcast %41 : vector<1x128xf32> to vector<4x128xf32>
    %54 = arith.mulf %53, %43 : vector<4x128xf32>
    %55 = arith.addf %52, %54 : vector<4x128xf32>
    %56 = arith.addf %36, %50 : vector<4x128xf32>
    %57 = arith.addf %37, %55 : vector<4x128xf32>
    %c0_33 = arith.constant 0 : index
    %c3 = arith.constant 3 : index
    %c0_34 = arith.constant 0 : index
    %58 = vector.load %arg2[%c0_33, %c3, %c0_34] : memref<1x4x128xf32, #tpu.memory_space<vmem>>, vector<1x1x128xf32>
    %59 = vector.shape_cast %58 : vector<1x1x128xf32> to vector<1x128xf32>
    %c0_35 = arith.constant 0 : index
    %c3_36 = arith.constant 3 : index
    %c0_37 = arith.constant 0 : index
    %60 = vector.load %arg3[%c0_35, %c3_36, %c0_37] : memref<1x4x128xf32, #tpu.memory_space<vmem>>, vector<1x1x128xf32>
    %61 = vector.shape_cast %60 : vector<1x1x128xf32> to vector<1x128xf32>
    %c3_38 = arith.constant 3 : index
    %c0_39 = arith.constant 0 : index
    %c0_40 = arith.constant 0 : index
    %62 = vector.load %arg4[%c3_38, %c0_39, %c0_40] : memref<4x4x128xf32, #tpu.memory_space<vmem>>, vector<1x4x128xf32>
    %63 = vector.shape_cast %62 : vector<1x4x128xf32> to vector<4x128xf32>
    %c3_41 = arith.constant 3 : index
    %c0_42 = arith.constant 0 : index
    %c0_43 = arith.constant 0 : index
    %64 = vector.load %arg5[%c3_41, %c0_42, %c0_43] : memref<4x4x128xf32, #tpu.memory_space<vmem>>, vector<1x4x128xf32>
    %65 = vector.shape_cast %64 : vector<1x4x128xf32> to vector<4x128xf32>
    %66 = vector.broadcast %59 : vector<1x128xf32> to vector<4x128xf32>
    %67 = arith.mulf %66, %63 : vector<4x128xf32>
    %68 = vector.broadcast %61 : vector<1x128xf32> to vector<4x128xf32>
    %69 = arith.mulf %68, %65 : vector<4x128xf32>
    %70 = arith.subf %67, %69 : vector<4x128xf32>
    %71 = vector.broadcast %59 : vector<1x128xf32> to vector<4x128xf32>
    %72 = arith.mulf %71, %65 : vector<4x128xf32>
    %73 = vector.broadcast %61 : vector<1x128xf32> to vector<4x128xf32>
    %74 = arith.mulf %73, %63 : vector<4x128xf32>
    %75 = arith.addf %72, %74 : vector<4x128xf32>
    %76 = arith.addf %56, %70 : vector<4x128xf32>
    %77 = arith.addf %57, %75 : vector<4x128xf32>
    %c0_44 = arith.constant 0 : index
    %c0_45 = arith.constant 0 : index
    %c0_46 = arith.constant 0 : index
    %78 = vector.load %arg6[%c0_44, %c0_45, %c0_46] : memref<1x4x128xf32, #tpu.memory_space<vmem>>, vector<1x4x128xf32>
    %79 = vector.shape_cast %78 : vector<1x4x128xf32> to vector<4x128xf32>
    %80 = vector.shape_cast %76 : vector<4x128xf32> to vector<1x4x128xf32>
    tpu.vector_store %arg6[%c0_44, %c0_45, %c0_46], %80 {strides = array<i32>} : memref<1x4x128xf32, #tpu.memory_space<vmem>>, vector<1x4x128xf32>,
    %c0_47 = arith.constant 0 : index
    %c0_48 = arith.constant 0 : index
    %c0_49 = arith.constant 0 : index
    %81 = vector.load %arg7[%c0_47, %c0_48, %c0_49] : memref<1x4x128xf32, #tpu.memory_space<vmem>>, vector<1x4x128xf32>
    %82 = vector.shape_cast %81 : vector<1x4x128xf32> to vector<4x128xf32>
    %83 = vector.shape_cast %77 : vector<4x128xf32> to vector<1x4x128xf32>
    tpu.vector_store %arg7[%c0_47, %c0_48, %c0_49], %83 {strides = array<i32>} : memref<1x4x128xf32, #tpu.memory_space<vmem>>, vector<1x4x128xf32>,
    return
  }
  func.func @transform_0(%arg0: i32, %arg1: i32) -> (i32, i32, i32) {
    %c0_i32 = arith.constant 0 : i32
    %c0_i32_0 = arith.constant 0 : i32
    %c0_i32_1 = arith.constant 0 : i32
    return %arg0, %c0_i32, %c0_i32_0 : i32, i32, i32
  }
  func.func @transform_1(%arg0: i32, %arg1: i32) -> (i32, i32, i32) {
    %c0_i32 = arith.constant 0 : i32
    %c0_i32_0 = arith.constant 0 : i32
    %c0_i32_1 = arith.constant 0 : i32
    return %arg0, %c0_i32, %c0_i32_0 : i32, i32, i32
  }
  func.func @transform_2(%arg0: i32, %arg1: i32) -> (i32, i32, i32) {
    %c0_i32 = arith.constant 0 : i32
    %c0_i32_0 = arith.constant 0 : i32
    %c0_i32_1 = arith.constant 0 : i32
    return %c0_i32, %arg1, %c0_i32_0 : i32, i32, i32
  }
  func.func @transform_3(%arg0: i32, %arg1: i32) -> (i32, i32, i32) {
    %c0_i32 = arith.constant 0 : i32
    %c0_i32_0 = arith.constant 0 : i32
    %c0_i32_1 = arith.constant 0 : i32
    return %c0_i32, %arg1, %c0_i32_0 : i32, i32, i32
  }
  func.func @transform_4(%arg0: i32, %arg1: i32) -> (i32, i32, i32) {
    %c0_i32 = arith.constant 0 : i32
    %c0_i32_0 = arith.constant 0 : i32
    return %arg0, %arg1, %c0_i32 : i32, i32, i32
  }
  func.func @transform_5(%arg0: i32, %arg1: i32) -> (i32, i32, i32) {
    %c0_i32 = arith.constant 0 : i32
    %c0_i32_0 = arith.constant 0 : i32
    return %arg0, %arg1, %c0_i32 : i32, i32, i32
  }
}

</mosaic_0001>

<bundles_post_ra>
// kernel: reverse.1
= control target key start
LH: loop header
LB: loop body
LE: loop exit
PB: predicated region body
PF: predicated region fallthrough
CT: control target
= control target key end

     0   :  { %v71_v3 = vlaneseq  ;;  %v64_v9 = vld [vmem:[#allocation0 + $0x7] ss:$-1 sm:$0xff]  ;;  %v78_v12 = vld [vmem:[#allocation0 + $0x17] ss:$-1 sm:$0xff]  ;;  %s329_s0 = inlined_call_operand.vmem [shape: f32[2,4,16,7], index: 0, kind: input, shape index: {}]   ;;  %s330_s1 = inlined_call_operand.vmem [shape: f32[2,4,16,7], index: 1, kind: output, shape index: {}]  }
   0x1   :  { %v44_v0 = vld [vmem:[%s329_s0] sm:$0xff]  ;;  %v46_v1 = vld [vmem:[%s329_s0 + $0x8] sm:$0xff]  ;;  %v48_v2 = vld [vmem:[%s329_s0 + $0x10] sm:$0xff]  ;;  %v65_v10 = vrot.slane %v64_v9, 1  ;;  %v79_v14 = vrot.slane %v78_v12, 1 }
   0x2   :  { %45 = vst [vmem:[#allocation0 + $0x8] sm:$0xff] %v44_v0  ;;  %47 = vst [vmem:[#allocation0 + $0x18] sm:$0xff] %v46_v1  ;;  %v50_v4 = vld [vmem:[%s329_s0 + $0x18] sm:$0xff]  ;;  %v52_v5 = vld [vmem:[%s329_s0 + $0x20] sm:$0xff]  ;;  %v72_v11 = vshrl.u32 %v71_v3, 7 }
   0x3   :  { %49 = vst [vmem:[#allocation0 + $0x28] sm:$0xff] %v48_v2  ;;  %v54_v6 = vld [vmem:[%s329_s0 + $0x28] sm:$0xff]  ;;  %51 = vst [vmem:[#allocation0 + $0x38] sm:$0xff] %v50_v4  ;;  %v56_v7 = vld [vmem:[%s329_s0 + $0x30] sm:$0xff] }
   0x4   :  { %53 = vst [vmem:[#allocation0 + $0x48] sm:$0xff] %v52_v5  ;;  %55 = vst [vmem:[#allocation0 + $0x58] sm:$0xff] %v54_v6  ;;  %v58_v8 = vld [vmem:[%s329_s0 + $0x38] sm:$0xff]  ;;  %v92_v13 = vld [vmem:[#allocation0 + $0x27] ss:$-1 sm:$0xff]  ;;  %vm73_vm0 = vcmp.lt.s32.totalorder %v72_v11, 7 }
   0x5   :  { %57 = vst [vmem:[#allocation0 + $0x68] sm:$0xff] %v56_v7  ;;  %59 = vst [vmem:[#allocation0 + $0x78] sm:$0xff] %v58_v8  ;;  %v93_v15 = vrot.slane %v92_v13, 1  ;;  %v106_v16 = vld [vmem:[#allocation0 + $0x37] ss:$-1 sm:$0xff] }
   0x6   :  { %66 = vst [vmem:[#allocation1] sm:$0xff] %v65_v10  ;;  %v107_v17 = vrot.slane %v106_v16, 1  ;;  %v120_v18 = vld [vmem:[#allocation0 + $0x47] ss:$-1 sm:$0xff]  ;;  %v134_v19 = vld [vmem:[#allocation0 + $0x57] ss:$-1 sm:$0xff] }
   0x7   :  { %80 = vst [vmem:[#allocation1 + $0x8] sm:$0xff] %v79_v14  ;;  %94 = vst [vmem:[#allocation1 + $0x10] sm:$0xff] %v93_v15  ;;  %v121_v20 = vrot.slane %v120_v18, 1  ;;  %v135_v21 = vrot.slane %v134_v19, 1  ;;  %v148_v22 = vld [vmem:[#allocation0 + $0x67] ss:$-1 sm:$0xff] }
   0x8   :  { %v162_v23 = vld [vmem:[#allocation0 + $0x77] ss:$-1 sm:$0xff]  ;;  %108 = vst [vmem:[#allocation1 + $0x18] sm:$0xff] %v107_v17  ;;  %v149_v24 = vrot.slane %v148_v22, 1 }
   0x9   :  { %v163_v25 = vrot.slane %v162_v23, 1  ;;  %v69_v26 = vld [vmem:[#allocation0 + $0xf] ss:$-1 sm:$0xff]  ;;  %v83_v27 = vld [vmem:[#allocation0 + $0x1f] ss:$-1 sm:$0xff]  ;;  %122 = vst [vmem:[#allocation1 + $0x20] sm:$0xff] %v121_v20 }
   0xa   :  { %v97_v28 = vld [vmem:[#allocation0 + $0x2f] ss:$-1 sm:$0xff]  ;;  %136 = vst [vmem:[#allocation1 + $0x28] sm:$0xff] %v135_v21  ;;  %v70_v29 = vrot.slane %v69_v26, 1  ;;  %v84_v30 = vrot.slane %v83_v27, 1  ;;  %150 = vst [vmem:[#allocation1 + $0x30] sm:$0xff] %v149_v24 }
   0xb   :  { %v98_v31 = vrot.slane %v97_v28, 1  ;;  %v111_v32 = vld [vmem:[#allocation0 + $0x3f] ss:$-1 sm:$0xff]  ;;  %164 = vst [vmem:[#allocation1 + $0x38] sm:$0xff] %v163_v25  ;;  %v125_v34 = vld [vmem:[#allocation0 + $0x4f] ss:$-1 sm:$0xff] }
   0xc   :  { %v112_v33 = vrot.slane %v111_v32, 1  ;;  %v139_v35 = vld [vmem:[#allocation0 + $0x5f] ss:$-1 sm:$0xff]  ;;  %74 = vst.msk [vmem:[#allocation1] sm:$0xff] %vm73_vm0, %v70_v29  ;;  %88 = vst.msk [vmem:[#allocation1 + $0x8] sm:$0xff] %vm73_vm0, %v84_v30  ;;  %v126_v36 = vrot.slane %v125_v34, 1 }
   0xd   :  { %102 = vst.msk [vmem:[#allocation1 + $0x10] sm:$0xff] %vm73_vm0, %v98_v31  ;;  %v140_v37 = vrot.slane %v139_v35, 1  ;;  %v153_v38 = vld [vmem:[#allocation0 + $0x6f] ss:$-1 sm:$0xff]  ;;  %v167_v39 = vld [vmem:[#allocation0 + $0x7f] ss:$-1 sm:$0xff] }
   0xe   :  { %116 = vst.msk [vmem:[#allocation1 + $0x18] sm:$0xff] %vm73_vm0, %v112_v33  ;;  %v154_v40 = vrot.slane %v153_v38, 1  ;;  %v168_v41 = vrot.slane %v167_v39, 1  ;;  %130 = vst.msk [vmem:[#allocation1 + $0x20] sm:$0xff] %vm73_vm0, %v126_v36 }
   0xf   :  { %144 = vst.msk [vmem:[#allocation1 + $0x28] sm:$0xff] %vm73_vm0, %v140_v37 }
  0x10   :  { %158 = vst.msk [vmem:[#allocation1 + $0x30] sm:$0xff] %vm73_vm0, %v154_v40  ;;  %172 = vst.msk [vmem:[#allocation1 + $0x38] sm:$0xff] %vm73_vm0, %v168_v41 }
  0x13   :  { %v214_v42 = vld [vmem:[#allocation1] sm:$0xff]  ;;  %v216_v43 = vld [vmem:[#allocation1 + $0x8] sm:$0xff] }
  0x14   :  { %v218_v44 = vld [vmem:[#allocation1 + $0x10] sm:$0xff]  ;;  %215 = vst [vmem:[%s330_s1] sm:$0xff] %v214_v42  ;;  %217 = vst [vmem:[%s330_s1 + $0x8] sm:$0xff] %v216_v43 }
  0x15   :  { %219 = vst [vmem:[%s330_s1 + $0x10] sm:$0xff] %v218_v44  ;;  %v220_v45 = vld [vmem:[#allocation1 + $0x18] sm:$0xff]  ;;  %v222_v46 = vld [vmem:[#allocation1 + $0x20] sm:$0xff] }
  0x16   :  { %221 = vst [vmem:[%s330_s1 + $0x18] sm:$0xff] %v220_v45  ;;  %v224_v47 = vld [vmem:[#allocation1 + $0x28] sm:$0xff]  ;;  %223 = vst [vmem:[%s330_s1 + $0x20] sm:$0xff] %v222_v46 }
  0x17   :  { %225 = vst [vmem:[%s330_s1 + $0x28] sm:$0xff] %v224_v47  ;;  %v226_v48 = vld [vmem:[#allocation1 + $0x30] sm:$0xff]  ;;  %v228_v49 = vld [vmem:[#allocation1 + $0x38] sm:$0xff] }
  0x18   :  { %227 = vst [vmem:[%s330_s1 + $0x30] sm:$0xff] %v226_v48  ;;  %229 = vst [vmem:[%s330_s1 + $0x38] sm:$0xff] %v228_v49 }

// kernel: _lambda_.1
= control target key start
LH: loop header
LB: loop body
LE: loop exit
PB: predicated region body
PF: predicated region fallthrough
CT: control target
= control target key end

     0   :  { %s656_s18 = smov 0   ;;  %s658_s19 = smov 0   ;;  %s725_s0 = inlined_call_operand.vmem [shape: f32[2,4,128], index: 0, kind: input, shape index: {}]   ;;  %s726_s1 = inlined_call_operand.vmem [shape: f32[2,4,128], index: 1, kind: input, shape index: {}]   ;;  %s727_s2 = inlined_call_operand.vmem [shape: f32[4,4,128], index: 2, kind: input, shape index: {}]   ;;  %s728_s3 = inlined_call_operand.vmem [shape: f32[4,4,128], index: 3, kind: input, shape index: {}]   ;;  %s729_s4 = inlined_call_operand.vmem [shape: f32[2,4,128], index: 4, kind: output, shape index: {0}]   ;;  %s730_s5 = inlined_call_operand.vmem [shape: f32[2,4,128], index: 5, kind: output, shape index: {1}]  }
   0x1   :  { %s660_s20 = smov 0  }
   0x2 LB: > { %s28_s21 = sadd.s32 1, %s620_s19  ;;  %p557_p0 = scmp.ge.s32.totalorder %s624_s20, 1  ;;  %s624_s20 = sphi %s660_s20, %s16_s20   ;;  %s620_s19 = sphi %s658_s19, %s732_s19   ;;  %s616_s18 = sphi %s656_s18, %s731_s18  }
   0x3   : > { %p30_p1 = scmp.ge.s32.totalorder %s28_s21, 2  ;;  %p232_p2 = scmp.lt.s32.totalorder %s624_s20, 3 }
   0x5   : > { %s734_s21 = smov (%p30_p1, %s28_s21), 0  ;;  %p233_p3 = pnand %p557_p0, %p232_p2 }
   0x6   : > { %p280_p4 = scmp.lt.s32.totalorder (!%p233_p3), %s616_s18, 1  ;;  %v312_v0 = vld [vmem:[%s727_s2] sm:$0xf] (!%p233_p3)  ;;  %v564_v2 = vld [vmem:[%s727_s2 + $0x4] sm:$0xf] (!%p233_p3) }
   0x7   : > { %236 = sbr.rel (%p233_p3) target bundleno = 31 (0x1f), region = 36  ;;  %v313_v1 = vld [vmem:[%s728_s3] sm:$0xf] (!%p233_p3)  ;;  %v565_v3 = vld [vmem:[%s728_s3 + $0x4] sm:$0xf] (!%p233_p3) }
   0x8   : > { %v568_v4 = vld [vmem:[%s727_s2 + $0x8] sm:$0xf] (!%p233_p3)  ;;  %v572_v6 = vld [vmem:[%s727_s2 + $0xc] sm:$0xf] (!%p233_p3) }
   0x9   : > { %v569_v5 = vld [vmem:[%s728_s3 + $0x8] sm:$0xf] (!%p233_p3)  ;;  %v573_v7 = vld [vmem:[%s728_s3 + $0xc] sm:$0xf] (!%p233_p3) }
   0xe   : > { %s736_s18 = smov (!%p280_p4, %s616_s18), 1 }
   0xf   : > { %s683_s28 = sshll.u32 %s736_s18, 2 }
  0x10   : > { %s283_s10 = scalar_lea.vmem %s725_s0, %s683_s28  ;;  %s287_s13 = scalar_lea.vmem %s726_s1, %s683_s28 }
  0x11   : > { %v562_v8 = vld [vmem:[%s283_s10] ss:$0 sm:$0xff]  ;;  %v566_v10 = vld [vmem:[%s283_s10 + $0x1] ss:$0 sm:$0xff]  ;;  %v570_v15 = vld [vmem:[%s283_s10 + $0x2] ss:$0 sm:$0xff]  ;;  %s302_s25 = scalar_lea.vmem %s729_s4, %s683_s28  ;;  %s309_s29 = scalar_lea.vmem %s730_s5, %s683_s28 }
  0x12   : > { %v563_v9 = vld [vmem:[%s287_s13] ss:$0 sm:$0xff]  ;;  %v318_v11 = vmul.f32 %v562_v8, %v312_v0  ;;  %v567_v13 = vld [vmem:[%s287_s13 + $0x1] ss:$0 sm:$0xff]  ;;  %v338_v14 = vmul.f32 %v566_v10, %v564_v2  ;;  %v571_v16 = vld [vmem:[%s287_s13 + $0x2] ss:$0 sm:$0xff]  ;;  %v325_v17 = vmul.f32 %v562_v8, %v313_v1  ;;  %v360_v19 = vmul.f32 %v570_v15, %v568_v4 }
  0x13   : > { %v323_v12 = vmul.f32 %v563_v9, %v313_v1  ;;  %v343_v18 = vmul.f32 %v567_v13, %v565_v3  ;;  %v365_v20 = vmul.f32 %v571_v16, %v569_v5  ;;  %v574_v21 = vld [vmem:[%s283_s10 + $0x3] ss:$0 sm:$0xff]  ;;  %v326_v23 = vmul.f32 %v563_v9, %v312_v0 }
  0x14   : > { %v575_v22 = vld [vmem:[%s287_s13 + $0x3] ss:$0 sm:$0xff]  ;;  %v382_v25 = vmul.f32 %v574_v21, %v572_v6  ;;  %v345_v27 = vmul.f32 %v566_v10, %v565_v3  ;;  %v346_v31 = vmul.f32 %v567_v13, %v564_v2  ;;  %v367_v32 = vmul.f32 %v570_v15, %v569_v5 }
  0x15   : > { %v324_v24 = vsub.f32 %v318_v11, %v323_v12  ;;  %v387_v26 = vmul.f32 %v575_v22, %v573_v7  ;;  %v344_v28 = vsub.f32 %v338_v14, %v343_v18  ;;  %v366_v29 = vsub.f32 %v360_v19, %v365_v20 }
  0x16   : > { %v327_v30 = vadd.f32 %v326_v23, %v325_v17  ;;  %v368_v33 = vmul.f32 %v571_v16, %v568_v4  ;;  %v389_v34 = vmul.f32 %v574_v21, %v573_v7  ;;  %v347_v37 = vadd.f32 %v346_v31, %v345_v27 }
  0x17   : > { %v348_v35 = vadd.f32 %v344_v28, %v324_v24  ;;  %v388_v36 = vsub.f32 %v382_v25, %v387_v26  ;;  %v390_v38 = vmul.f32 %v575_v22, %v572_v6 }
  0x18   : > { %v369_v39 = vadd.f32 %v368_v33, %v367_v32  ;;  %v349_v41 = vadd.f32 %v347_v37, %v327_v30 }
  0x19   : > { %v370_v40 = vadd.f32 %v366_v29, %v348_v35  ;;  %v391_v42 = vadd.f32 %v390_v38, %v389_v34 }
  0x1a   : > { %v371_v44 = vadd.f32 %v369_v39, %v349_v41 }
  0x1b   : > { %v392_v43 = vadd.f32 %v388_v36, %v370_v40 }
  0x1c   : > { %v393_v45 = vadd.f32 %v391_v42, %v371_v44 }
  0x1d   : > { %394 = vst [vmem:[%s302_s25] sm:$0xf] %v392_v43 }
  0x1e   : > { %395 = vst [vmem:[%s309_s29] sm:$0xf] %v393_v45 }
  0x1f PF: > { %s16_s20 = sadd.s32 1, %s624_s20   ;;  %s731_s18 = smov %s620_s19 }
  0x20   : > { %p13_p5 = scmp.ge.s32.totalorder %s16_s20, 4   ;;  %s732_s19 = smov %s734_s21 }
  0x22   :  { %15 = sbr.rel (!%p13_p5) target bundleno = 2 (0x2), region = 93 }

</bundles_post_ra>
